<compile_context>
chip_gen: v6e
topology: v6e:2x2x1
jax: 0.10.0
libtpu: 0.0.40
codegen_flags: <defaults>
</compile_context>

<pallas_src>
import functools

import jax
import jax.numpy as jnp
from jax.experimental import pallas as pl
from jax.experimental.pallas import tpu as pltpu


def _round_up(n, m):
    return (n + m - 1) // m * m


def _mlp_kernel(n_layers, x_ref, *refs):
    """Fused MLP forward: all Linear(+Tanh) layers in one kernel invocation.

    refs = (w0, b0, w1, b1, ..., w_{L-1}, b_{L-1}, out_ref)
    """
    out_ref = refs[-1]
    param_refs = refs[:-1]

    h = x_ref[...]  # (block_batch, in_pad), already f32
    for i in range(n_layers):
        w = param_refs[2 * i][...]
        b = param_refs[2 * i + 1][...]
        # MXU matmul with f32 accumulation, bias add on VPU.
        h = jnp.dot(h.astype(w.dtype), w, preferred_element_type=jnp.float32) + b
        if i < n_layers - 1:
            h = jnp.tanh(h)  # EUP transcendental
    out_ref[...] = h.astype(out_ref.dtype)


def dnn_forward(x, weights, biases, *, block_batch=None, use_bf16_weights=False):
    """Run the fused MLP Pallas kernel.

    x:       (B, layers[0]) float32
    weights: list of (layers[i], layers[i+1]) arrays (transposed vs torch Linear.weight)
    biases:  list of (layers[i+1],) arrays
    """
    B, in_dim = x.shape
    n_layers = len(weights)
    out_dim = weights[-1].shape[1]

    # ---- one-time host-side zero-padding to lane/sublane friendly shapes ----
    # Feature dims -> multiples of 128 (lane-dense loads/stores, full MXU tiles).
    # Batch        -> multiple of 8 (sublane alignment).
    dims = [in_dim] + [w.shape[1] for w in weights]
    dims_p = [_round_up(d, 128) for d in dims]
    B_pad = _round_up(B, 8)

    x_p = jnp.pad(x, ((0, B_pad - B), (0, dims_p[0] - in_dim)))

    w_dtype = jnp.bfloat16 if use_bf16_weights else jnp.float32
    weights_p, biases_p = [], []
    for i, (w, b) in enumerate(zip(weights, biases)):
        kin, kout = w.shape
        wp = jnp.pad(w, ((0, dims_p[i] - kin), (0, dims_p[i + 1] - kout)))
        bp = jnp.pad(b, (0, dims_p[i + 1] - kout)).reshape(1, -1)
        weights_p.append(wp.astype(w_dtype))
        biases_p.append(bp.astype(jnp.float32))
    out_pad = dims_p[-1]

    # ---- grid: one step by default (per-step overhead >> per-tile compute) ----
    if block_batch is None:
        block_batch = B_pad
    assert B_pad % block_batch == 0, "padded batch must be divisible by block_batch"
    grid = (B_pad // block_batch,)

    x_spec = pl.BlockSpec((block_batch, dims_p[0]), lambda i: (i, 0))
    param_specs = []
    for wp, bp in zip(weights_p, biases_p):
        param_specs.append(pl.BlockSpec(wp.shape, lambda i: (0, 0)))
        param_specs.append(pl.BlockSpec(bp.shape, lambda i: (0, 0)))
    out_spec = pl.BlockSpec((block_batch, out_pad), lambda i: (i, 0))

    # ---- advisory cost estimate for the XLA scheduler ----
    flops = sum(2 * B_pad * wp.shape[0] * wp.shape[1] for wp in weights_p)
    transcendentals = sum(B_pad * wp.shape[1] for wp in weights_p[:-1])
    bytes_accessed = (
        x_p.size * x_p.dtype.itemsize
        + sum(a.size * a.dtype.itemsize for a in weights_p)
        + sum(a.size * a.dtype.itemsize for a in biases_p)
        + B_pad * out_pad * 4
    )

    kernel = functools.partial(_mlp_kernel, n_layers)

    flat_params = []
    for wp, bp in zip(weights_p, biases_p):
        flat_params.extend([wp, bp])

    out_padded = pl.pallas_call(
        kernel,
        out_shape=jax.ShapeDtypeStruct((B_pad, out_pad), jnp.float32),
        grid=grid,
        in_specs=[x_spec] + param_specs,
        out_specs=out_spec,
        compiler_params=pltpu.CompilerParams(
            dimension_semantics=("parallel",)
        ),
        cost_estimate=pl.CostEstimate(
            flops=flops,
            transcendentals=transcendentals,
            bytes_accessed=bytes_accessed,
        ),
    )(x_p, *flat_params)

    # slice back to the logical output shape
    return out_padded[:B, :out_dim].astype(x.dtype)


def _init_params(key, layers):
    """Deterministic init mimicking torch.nn.Linear default (U[-1/sqrt(fan_in), 1/sqrt(fan_in)])."""
    weights, biases = [], []
    for i in range(len(layers) - 1):
        fan_in, fan_out = layers[i], layers[i + 1]
        key, kw, kb = jax.random.split(key, 3)
        bound = 1.0 / jnp.sqrt(fan_in)
        # stored as (in, out): transpose of torch's (out, in) weight
        w = jax.random.uniform(kw, (fan_in, fan_out), jnp.float32, -bound, bound)
        b = jax.random.uniform(kb, (fan_out,), jnp.float32, -bound, bound)
        weights.append(w)
        biases.append(b)
    return weights, biases


def _reference_forward(x, weights, biases):
    h = x
    n = len(weights)
    for i in range(n):
        h = h @ weights[i] + biases[i]
        if i < n - 1:
            h = jnp.tanh(h)
    return h


if __name__ == "__main__":
    # DNN(layers=[8, 32, 32, 4]):  Linear(8,32)+Tanh -> Linear(32,32)+Tanh -> Linear(32,4)
    layers = [8, 32, 32, 4]
    batch = 64

    key = jax.random.PRNGKey(0)
    key, kx = jax.random.split(key)
    x = jax.random.normal(kx, (batch, layers[0]), dtype=jnp.float32)

    weights, biases = _init_params(key, layers)

    out = dnn_forward(x, weights, biases)  # default: grid=(1,), padded lane-dense layout
    out = jax.block_until_ready(out)

    ref = _reference_forward(x, weights, biases)
    assert out.shape == (batch, layers[-1])
    assert jnp.allclose(out, ref, atol=1e-5, rtol=1e-5), "Pallas output mismatch vs reference"

    print("KERNEL_OK")
</pallas_src>

<mosaic_0001>
module attributes {stable_mosaic.version = 11 : i64} {
  func.func @_mlp_kernel(%arg0: i32, %arg1: memref<64x128xf32, #tpu.memory_space<vmem>>, %arg2: memref<128x128xf32, #tpu.memory_space<vmem>>, %arg3: memref<1x128xf32, #tpu.memory_space<vmem>>, %arg4: memref<128x128xf32, #tpu.memory_space<vmem>>, %arg5: memref<1x128xf32, #tpu.memory_space<vmem>>, %arg6: memref<128x128xf32, #tpu.memory_space<vmem>>, %arg7: memref<1x128xf32, #tpu.memory_space<vmem>>, %arg8: memref<64x128xf32, #tpu.memory_space<vmem>>) attributes {dimension_semantics = [#tpu.dimension_semantics<parallel>], iteration_bounds = array<i64: 1>, scalar_prefetch = 0 : i64, scratch_operands = 0 : i64, tpu.core_type = #tpu.core_type<tc>, window_params = [{transform_indices = @transform_0, window_bounds = array<i64: 64, 128>}, {pipeline_mode = #tpu.pipeline_mode<synchronous>, transform_indices = @transform_1, window_bounds = array<i64: 128, 128>}, {pipeline_mode = #tpu.pipeline_mode<synchronous>, transform_indices = @transform_2, window_bounds = array<i64: 1, 128>}, {pipeline_mode = #tpu.pipeline_mode<synchronous>, transform_indices = @transform_3, window_bounds = array<i64: 128, 128>}, {pipeline_mode = #tpu.pipeline_mode<synchronous>, transform_indices = @transform_4, window_bounds = array<i64: 1, 128>}, {pipeline_mode = #tpu.pipeline_mode<synchronous>, transform_indices = @transform_5, window_bounds = array<i64: 128, 128>}, {pipeline_mode = #tpu.pipeline_mode<synchronous>, transform_indices = @transform_6, window_bounds = array<i64: 1, 128>}, {transform_indices = @transform_7, window_bounds = array<i64: 64, 128>}]} {
    %c0 = arith.constant 0 : index
    %c0_0 = arith.constant 0 : index
    %0 = vector.load %arg1[%c0, %c0_0] : memref<64x128xf32, #tpu.memory_space<vmem>>, vector<64x128xf32>
    %c0_1 = arith.constant 0 : index
    %c0_2 = arith.constant 0 : index
    %1 = vector.load %arg2[%c0_1, %c0_2] : memref<128x128xf32, #tpu.memory_space<vmem>>, vector<128x128xf32>
    %c0_3 = arith.constant 0 : index
    %c0_4 = arith.constant 0 : index
    %2 = vector.load %arg3[%c0_3, %c0_4] : memref<1x128xf32, #tpu.memory_space<vmem>>, vector<1x128xf32>
    %cst = arith.constant dense<0.000000e+00> : vector<64x128xf32>
    %3 = tpu.matmul %0, %1, %cst {dimension_numbers = #tpu.dot_dimension_numbers<[1], [0], [0], [1], [0, 0, 1, 1], [], []>} : vector<64x128xf32>, vector<128x128xf32>, vector<64x128xf32> -> vector<64x128xf32>
    %4 = vector.broadcast %2 : vector<1x128xf32> to vector<64x128xf32>
    %5 = arith.addf %3, %4 : vector<64x128xf32>
    %6 = math.tanh %5 : vector<64x128xf32>
    %c0_5 = arith.constant 0 : index
    %c0_6 = arith.constant 0 : index
    %7 = vector.load %arg4[%c0_5, %c0_6] : memref<128x128xf32, #tpu.memory_space<vmem>>, vector<128x128xf32>
    %c0_7 = arith.constant 0 : index
    %c0_8 = arith.constant 0 : index
    %8 = vector.load %arg5[%c0_7, %c0_8] : memref<1x128xf32, #tpu.memory_space<vmem>>, vector<1x128xf32>
    %cst_9 = arith.constant dense<0.000000e+00> : vector<64x128xf32>
    %9 = tpu.matmul %6, %7, %cst_9 {dimension_numbers = #tpu.dot_dimension_numbers<[1], [0], [0], [1], [0, 0, 1, 1], [], []>} : vector<64x128xf32>, vector<128x128xf32>, vector<64x128xf32> -> vector<64x128xf32>
    %10 = vector.broadcast %8 : vector<1x128xf32> to vector<64x128xf32>
    %11 = arith.addf %9, %10 : vector<64x128xf32>
    %12 = math.tanh %11 : vector<64x128xf32>
    %c0_10 = arith.constant 0 : index
    %c0_11 = arith.constant 0 : index
    %13 = vector.load %arg6[%c0_10, %c0_11] : memref<128x128xf32, #tpu.memory_space<vmem>>, vector<128x128xf32>
    %c0_12 = arith.constant 0 : index
    %c0_13 = arith.constant 0 : index
    %14 = vector.load %arg7[%c0_12, %c0_13] : memref<1x128xf32, #tpu.memory_space<vmem>>, vector<1x128xf32>
    %cst_14 = arith.constant dense<0.000000e+00> : vector<64x128xf32>
    %15 = tpu.matmul %12, %13, %cst_14 {dimension_numbers = #tpu.dot_dimension_numbers<[1], [0], [0], [1], [0, 0, 1, 1], [], []>} : vector<64x128xf32>, vector<128x128xf32>, vector<64x128xf32> -> vector<64x128xf32>
    %16 = vector.broadcast %14 : vector<1x128xf32> to vector<64x128xf32>
    %17 = arith.addf %15, %16 : vector<64x128xf32>
    %c0_15 = arith.constant 0 : index
    %c0_16 = arith.constant 0 : index
    %18 = vector.load %arg8[%c0_15, %c0_16] : memref<64x128xf32, #tpu.memory_space<vmem>>, vector<64x128xf32>
    tpu.vector_store %arg8[%c0_15, %c0_16], %17 {strides = array<i32>} : memref<64x128xf32, #tpu.memory_space<vmem>>, vector<64x128xf32>,
    return
  }
  func.func @transform_0(%arg0: i32) -> (i32, i32) {
    %c0_i32 = arith.constant 0 : i32
    %c0_i32_0 = arith.constant 0 : i32
    return %arg0, %c0_i32 : i32, i32
  }
  func.func @transform_1(%arg0: i32) -> (i32, i32) {
    %c0_i32 = arith.constant 0 : i32
    %c0_i32_0 = arith.constant 0 : i32
    %c0_i32_1 = arith.constant 0 : i32
    return %c0_i32, %c0_i32_0 : i32, i32
  }
  func.func @transform_2(%arg0: i32) -> (i32, i32) {
    %c0_i32 = arith.constant 0 : i32
    %c0_i32_0 = arith.constant 0 : i32
    %c0_i32_1 = arith.constant 0 : i32
    return %c0_i32, %c0_i32_0 : i32, i32
  }
  func.func @transform_3(%arg0: i32) -> (i32, i32) {
    %c0_i32 = arith.constant 0 : i32
    %c0_i32_0 = arith.constant 0 : i32
    %c0_i32_1 = arith.constant 0 : i32
    return %c0_i32, %c0_i32_0 : i32, i32
  }
  func.func @transform_4(%arg0: i32) -> (i32, i32) {
    %c0_i32 = arith.constant 0 : i32
    %c0_i32_0 = arith.constant 0 : i32
    %c0_i32_1 = arith.constant 0 : i32
    return %c0_i32, %c0_i32_0 : i32, i32
  }
  func.func @transform_5(%arg0: i32) -> (i32, i32) {
    %c0_i32 = arith.constant 0 : i32
    %c0_i32_0 = arith.constant 0 : i32
    %c0_i32_1 = arith.constant 0 : i32
    return %c0_i32, %c0_i32_0 : i32, i32
  }
  func.func @transform_6(%arg0: i32) -> (i32, i32) {
    %c0_i32 = arith.constant 0 : i32
    %c0_i32_0 = arith.constant 0 : i32
    %c0_i32_1 = arith.constant 0 : i32
    return %c0_i32, %c0_i32_0 : i32, i32
  }
  func.func @transform_7(%arg0: i32) -> (i32, i32) {
    %c0_i32 = arith.constant 0 : i32
    %c0_i32_0 = arith.constant 0 : i32
    return %arg0, %c0_i32 : i32, i32
  }
}

</mosaic_0001>

<bundles_post_ra>
// kernel: tpu_custom_call.1
= control target key start
LH: loop header
LB: loop body
LE: loop exit
PB: predicated region body
PF: predicated region fallthrough
CT: control target
= control target key end

     0   :  { %12 = vsyncpa [#allocation3], 0  ;;  %s989_s0 = inlined_call_operand.hbm [shape: f32[64,128], index: 0, kind: input, shape index: {}]   ;;  %s990_s1 = inlined_call_operand.hbm [shape: f32[128,128], index: 1, kind: input, shape index: {}]   ;;  %s991_s2 = inlined_call_operand.vmem [shape: f32[1,128], index: 2, kind: input, shape index: {}]   ;;  %s992_s3 = inlined_call_operand.hbm [shape: f32[128,128], index: 3, kind: input, shape index: {}]   ;;  %s993_s4 = inlined_call_operand.vmem [shape: f32[1,128], index: 4, kind: input, shape index: {}]   ;;  %s994_s5 = inlined_call_operand.hbm [shape: f32[128,128], index: 5, kind: input, shape index: {}]   ;;  %s995_s6 = inlined_call_operand.vmem [shape: f32[1,128], index: 6, kind: input, shape index: {}]   ;;  %s996_s7 = inlined_call_operand.hbm [shape: f32[64,128], index: 7, kind: output, shape index: {}]  }
   0x1   :  { %13 = vsyncpa [#allocation6], 0 }
   0x2   :  { %14 = vsyncpa [#allocation9], 0 }
   0x3   :  { %15 = vsyncpa [#allocation4], 0  ;;  %s903_s24 = smov [#allocation5]   ;;  %s904_s26 = smov [#allocation2]  }
   0x4   :  { %s33_s25 = sshll.u32 %s903_s24, 4  ;;  %s21_s27 = sshll.u32 %s904_s26, 4  ;;  %s34_s25 = int_to_ptr.vmem [resolvable:$true] %s33_s25  ;;  %s22_s27 = int_to_ptr.vmem [resolvable:$true] %s21_s27 }
   0x5   :  { %s803_s28 = scalar_lea.vmem %s34_s25, 2048  ;;  %p808_p1 = scmp.lt.s32.totalorder %s34_s25, %s34_s25 }
   0x6   :  { %p804_p0 = scmp.ne.s32.totalorder %s34_s25, %s803_s28  ;;  %p809_p2 = scmp.lt.s32.totalorder %s803_s28, %s803_s28 }
   0x8   :  { %p810_p3 = por %p809_p2, %p808_p1 }
   0xa   :  { %p811_p4 = pnand %p810_p3, %p804_p0 }
   0xc   :  { %814 = shalt.err (!%p811_p4)
}
   0xd   :  { %s905_s29 = smov 128   ;;  %s906_s30 = smov 8  }
   0xe   :  { %39 = dma.hbm_to_vmem [thread:$0]  %s990_s1, 2048, %s34_s25, [#allocation6], %s905_s29, %s905_s29, %s906_s30  }
   0xf   :  { %s823_s10 = scalar_lea.vmem %s22_s27, 1024  ;;  %p828_p6 = scmp.lt.s32.totalorder %s22_s27, %s22_s27 }
  0x10   :  { %p824_p5 = scmp.ne.s32.totalorder %s22_s27, %s823_s10  ;;  %p829_p7 = scmp.lt.s32.totalorder %s823_s10, %s823_s10 }
  0x12   :  { %p830_p8 = por %p829_p7, %p828_p6 }
  0x14   :  { %p831_p9 = pnand %p830_p8, %p824_p5 }
  0x16   :  { %834 = shalt.err (!%p831_p9)
}
  0x17   :  { %27 = dma.hbm_to_vmem [thread:$0]  %s989_s0, 1024, %s22_s27, [#allocation3], %s905_s29, %s905_s29, %s906_s30  }
  0x18   :  { %s907_s13 = smov [#allocation7]   ;;  %s908_s15 = smov [#allocation8]  }
  0x19   :  { %s47_s14 = sshll.u32 %s907_s13, 4  ;;  %s61_s16 = sshll.u32 %s908_s15, 4  ;;  %s48_s14 = int_to_ptr.vmem [resolvable:$true] %s47_s14  ;;  %s62_s16 = int_to_ptr.vmem [resolvable:$true] %s61_s16 }
  0x1a   :  { %s843_s1 = scalar_lea.vmem %s48_s14, 2048  ;;  %p848_p11 = scmp.lt.s32.totalorder %s48_s14, %s48_s14 }
  0x1b   :  { %p844_p10 = scmp.ne.s32.totalorder %s48_s14, %s843_s1  ;;  %p849_p12 = scmp.lt.s32.totalorder %s843_s1, %s843_s1 }
  0x1d   :  { %p850_p13 = por %p849_p12, %p848_p11 }
  0x1f   :  { %p851_p0 = pnand %p850_p13, %p844_p10 }
  0x21   :  { %854 = shalt.err (!%p851_p0)
}
  0x22   :  { %53 = dma.hbm_to_vmem [thread:$0]  %s992_s3, 2048, %s48_s14, [#allocation6], %s905_s29, %s905_s29, %s906_s30  }
  0x23   :  { %s863_s0 = scalar_lea.vmem %s62_s16, 2048  ;;  %p868_p2 = scmp.lt.s32.totalorder %s62_s16, %s62_s16 }
  0x24   :  { %p864_p1 = scmp.ne.s32.totalorder %s62_s16, %s863_s0  ;;  %p869_p3 = scmp.lt.s32.totalorder %s863_s0, %s863_s0 }
  0x26   :  { %p870_p4 = por %p869_p3, %p868_p2 }
  0x28   :  { %p871_p5 = pnand %p870_p4, %p864_p1 }
  0x2a   :  { %874 = shalt.err (!%p871_p5)
}
  0x2b   :  { %67 = dma.hbm_to_vmem [thread:$0]  %s994_s5, 2048, %s62_s16, [#allocation9], %s905_s29, %s905_s29, %s906_s30  }
  0x2c   :  { %895 = dma.done.wait [#allocation3], 1024  }
  0x2d   :  { %896 = vsyncadd [#allocation3], 4294966272 }
  0x2e   :  { %897 = dma.done.wait [#allocation6], 4096  }
  0x2f   :  { %898 = vsyncadd [#allocation6], 4294963200 }
  0x30   :  { %899 = dma.done.wait [#allocation9], 2048  }
  0x31   :  { %900 = vsyncadd [#allocation9], 4294965248  ;;  %v105_v0 = vld [vmem:[#allocation5 + $0x78] sm:$0xff]  ;;  %v104_v1 = vld [vmem:[#allocation5 + $0x70] sm:$0xff]  ;;  %s909_s23 = smov [#allocation10]  }
  0x32   :  { %592 = vmatprep.subr.mxu0 %v105_v0  ;;  %v103_v2 = vld [vmem:[#allocation5 + $0x68] sm:$0xff]  ;;  %v102_v3 = vld [vmem:[#allocation5 + $0x60] sm:$0xff]  ;;  %v101_v5 = vld [vmem:[#allocation5 + $0x58] sm:$0xff] }
  0x33   :  { %593 = vmatpush3.msra.mxu0 %v105_v0  ;;  %v82_v4 = vld [vmem:[#allocation2] sm:$0xff]  ;;  %v100_v6 = vld [vmem:[#allocation5 + $0x50] sm:$0xff]  ;;  %v241_v7 = vld [vmem:[#allocation7 + $0x78] sm:$0xff] }
  0x34   :  { %594 = vmatprep.subr.mxu0 %v104_v1  ;;  %624 = vmatprep.mubr.f32.mxu0 %v82_v4  ;;  %v240_v8 = vld [vmem:[#allocation7 + $0x70] sm:$0xff]  ;;  %v99_v9 = vld [vmem:[#allocation5 + $0x48] sm:$0xff]  ;;  %v98_v11 = vld [vmem:[#allocation5 + $0x40] sm:$0xff] }
  0x35   :  { %595 = vmatpush3.msra.mxu0 %v104_v1  ;;  %636 = vmatprep.subr.mxu1 %v241_v7  ;;  %v239_v10 = vld [vmem:[#allocation7 + $0x68] sm:$0xff]  ;;  %v238_v12 = vld [vmem:[#allocation7 + $0x60] sm:$0xff]  ;;  %v97_v13 = vld [vmem:[#allocation5 + $0x38] sm:$0xff] }
  0x36   :  { %596 = vmatprep.subr.mxu0 %v103_v2  ;;  %637 = vmatpush3.msra.mxu1 %v241_v7  ;;  %v237_v14 = vld [vmem:[#allocation7 + $0x58] sm:$0xff]  ;;  %v96_v15 = vld [vmem:[#allocation5 + $0x30] sm:$0xff]  ;;  %v95_v17 = vld [vmem:[#allocation5 + $0x28] sm:$0xff] }
  0x37   :  { %597 = vmatpush3.msra.mxu0 %v103_v2  ;;  %638 = vmatprep.subr.mxu1 %v240_v8  ;;  %v236_v16 = vld [vmem:[#allocation7 + $0x50] sm:$0xff]  ;;  %v94_v18 = vld [vmem:[#allocation5 + $0x20] sm:$0xff]  ;;  %v93_v19 = vld [vmem:[#allocation5 + $0x18] sm:$0xff] }
  0x38   :  { %598 = vmatprep.subr.mxu0 %v102_v3  ;;  %639 = vmatpush3.msra.mxu1 %v240_v8  ;;  %v92_v20 = vld [vmem:[#allocation5 + $0x10] sm:$0xff]  ;;  %v91_v21 = vld [vmem:[#allocation5 + $0x8] sm:$0xff]  ;;  %v90_v22 = vld [vmem:[#allocation5] sm:$0xff] }
  0x39   :  { %599 = vmatpush3.msra.mxu0 %v102_v3  ;;  %640 = vmatprep.subr.mxu1 %v239_v10  ;;  %v83_v23 = vld [vmem:[#allocation2 + $0x8] sm:$0xff]  ;;  %v84_v24 = vld [vmem:[#allocation2 + $0x10] sm:$0xff]  ;;  %v85_v25 = vld [vmem:[#allocation2 + $0x18] sm:$0xff] }
  0x3a   :  { %600 = vmatprep.subr.mxu0 %v101_v5  ;;  %641 = vmatpush3.msra.mxu1 %v239_v10  ;;  %v86_v26 = vld [vmem:[#allocation2 + $0x20] sm:$0xff]  ;;  %v87_v27 = vld [vmem:[#allocation2 + $0x28] sm:$0xff]  ;;  %v88_v28 = vld [vmem:[#allocation2 + $0x30] sm:$0xff] }
  0x3b   :  { %601 = vmatpush3.msra.mxu0 %v101_v5  ;;  %642 = vmatprep.subr.mxu1 %v238_v12  ;;  %v89_v29 = vld [vmem:[#allocation2 + $0x38] sm:$0xff]  ;;  %v235_v30 = vld [vmem:[#allocation7 + $0x48] sm:$0xff]  ;;  %v234_v31 = vld [vmem:[#allocation7 + $0x40] sm:$0xff] }
  0x3c   :  { %602 = vmatprep.subr.mxu0 %v100_v6  ;;  %643 = vmatpush3.msra.mxu1 %v238_v12  ;;  %v233_v32 = vld [vmem:[#allocation7 + $0x38] sm:$0xff]  ;;  %v232_v33 = vld [vmem:[#allocation7 + $0x30] sm:$0xff]  ;;  %v231_v34 = vld [vmem:[#allocation7 + $0x28] sm:$0xff] }
  0x3d   :  { %603 = vmatpush3.msra.mxu0 %v100_v6  ;;  %644 = vmatprep.subr.mxu1 %v237_v14  ;;  %v230_v35 = vld [vmem:[#allocation7 + $0x20] sm:$0xff]  ;;  %v229_v36 = vld [vmem:[#allocation7 + $0x18] sm:$0xff]  ;;  %v228_v37 = vld [vmem:[#allocation7 + $0x10] sm:$0xff] }
  0x3e   :  { %604 = vmatprep.subr.mxu0 %v99_v9  ;;  %645 = vmatpush3.msra.mxu1 %v237_v14  ;;  %v227_v38 = vld [vmem:[#allocation7 + $0x8] sm:$0xff]  ;;  %v226_v39 = vld [vmem:[#allocation7] sm:$0xff]  ;;  %v377_v40 = vld [vmem:[#allocation8 + $0x78] sm:$0xff] }
  0x3f   :  { %605 = vmatpush3.msra.mxu0 %v99_v9  ;;  %646 = vmatprep.subr.mxu1 %v236_v16  ;;  %v376_v41 = vld [vmem:[#allocation8 + $0x70] sm:$0xff]  ;;  %v375_v42 = vld [vmem:[#allocation8 + $0x68] sm:$0xff]  ;;  %v374_v43 = vld [vmem:[#allocation8 + $0x60] sm:$0xff] }
  0x40   :  { %606 = vmatprep.subr.mxu0 %v98_v11  ;;  %647 = vmatpush3.msra.mxu1 %v236_v16  ;;  %v373_v44 = vld [vmem:[#allocation8 + $0x58] sm:$0xff]  ;;  %v372_v45 = vld [vmem:[#allocation8 + $0x50] sm:$0xff]  ;;  %v517_v46 = vld [vmem:[%s991_s2] ss:$0 sm:$0xff] }
  0x41   :  { %607 = vmatpush3.msra.mxu0 %v98_v11  ;;  %648 = vmatprep.subr.mxu1 %v235_v30  ;;  %v371_v7 = vld [vmem:[#allocation8 + $0x48] sm:$0xff]  ;;  %v370_v8 = vld [vmem:[#allocation8 + $0x40] sm:$0xff]  ;;  %v369_v9 = vld [vmem:[#allocation8 + $0x38] sm:$0xff] }
  0x42   :  { %608 = vmatprep.subr.mxu0 %v97_v13  ;;  %649 = vmatpush3.msra.mxu1 %v235_v30  ;;  %v368_v10 = vld [vmem:[#allocation8 + $0x30] sm:$0xff]  ;;  %v367_v11 = vld [vmem:[#allocation8 + $0x28] sm:$0xff]  ;;  %v366_v12 = vld [vmem:[#allocation8 + $0x20] sm:$0xff] }
  0x43   :  { %609 = vmatpush3.msra.mxu0 %v97_v13  ;;  %650 = vmatprep.subr.mxu1 %v234_v31  ;;  %v365_v13 = vld [vmem:[#allocation8 + $0x18] sm:$0xff]  ;;  %v364_v14 = vld [vmem:[#allocation8 + $0x10] sm:$0xff]  ;;  %v362_v16 = vld [vmem:[#allocation8] sm:$0xff] }
  0x44   :  { %610 = vmatprep.subr.mxu0 %v96_v15  ;;  %651 = vmatpush3.msra.mxu1 %v234_v31 }
  0x45   :  { %611 = vmatpush3.msra.mxu0 %v96_v15  ;;  %652 = vmatprep.subr.mxu1 %v233_v32  ;;  %v363_v15 = vld [vmem:[#allocation8 + $0x8] sm:$0xff] }
  0x46   :  { %612 = vmatprep.subr.mxu0 %v95_v17  ;;  %653 = vmatpush3.msra.mxu1 %v233_v32 }
  0x47   :  { %613 = vmatpush3.msra.mxu0 %v95_v17  ;;  %654 = vmatprep.subr.mxu1 %v232_v33  ;;  %v518_v17 = vld [vmem:[%s993_s4] ss:$0 sm:$0xff] }
  0x48   :  { %614 = vmatprep.subr.mxu0 %v94_v18  ;;  %655 = vmatpush3.msra.mxu1 %v232_v33 }
  0x49   :  { %615 = vmatpush3.msra.mxu0 %v94_v18  ;;  %656 = vmatprep.subr.mxu1 %v231_v34 }
  0x4a   :  { %616 = vmatprep.subr.mxu0 %v93_v19  ;;  %657 = vmatpush3.msra.mxu1 %v231_v34 }
  0x4b   :  { %617 = vmatpush3.msra.mxu0 %v93_v19  ;;  %658 = vmatprep.subr.mxu1 %v230_v35 }
  0x4c   :  { %618 = vmatprep.subr.mxu0 %v92_v20  ;;  %659 = vmatpush3.msra.mxu1 %v230_v35 }
  0x4d   :  { %619 = vmatpush3.msra.mxu0 %v92_v20  ;;  %660 = vmatprep.subr.mxu1 %v229_v36 }
  0x4e   :  { %620 = vmatprep.subr.mxu0 %v91_v21  ;;  %661 = vmatpush3.msra.mxu1 %v229_v36 }
  0x4f   :  { %621 = vmatpush3.msra.mxu0 %v91_v21  ;;  %662 = vmatprep.subr.mxu1 %v228_v37 }
  0x50   :  { %622 = vmatprep.subr.mxu0 %v90_v22  ;;  %663 = vmatpush3.msra.mxu1 %v228_v37 }
  0x51   :  { %623 = vmatpush3.msra.mxu0 %v90_v22  ;;  %664 = vmatprep.subr.mxu1 %v227_v38 }
  0x52   :  { %625 = vmatmul.mubr.f32.vlgmr.msra.gmra.mxu0 %v83_v23  ;;  %665 = vmatpush3.msra.mxu1 %v227_v38 }
  0x53   :  { %627 = vmatprep.mubr.f32.mxu0 %v84_v24  ;;  %666 = vmatprep.subr.mxu1 %v226_v39 }
  0x54   :  { %667 = vmatpush3.msra.mxu1 %v226_v39  ;;  %680 = vmatprep.subr.mxu0 %v377_v40 }
  0x55   :  { %724 = vmatprep.subr.mxu1 %v377_v40  ;;  %681 = vmatpush3.msra.mxu0 %v377_v40 }
  0x56   :  { %628 = vmatmul.mubr.f32.gmra.mxu0 %v85_v25  ;;  %682 = vmatprep.subr.mxu0 %v376_v41 }
  0x57   :  { %630 = vmatprep.mubr.f32.mxu0 %v86_v26  ;;  %683 = vmatpush3.msra.mxu0 %v376_v41 }
  0x58   :  { %684 = vmatprep.subr.mxu0 %v375_v42 }
  0x59   :  { %685 = vmatpush3.msra.mxu0 %v375_v42 }
  0x5a   :  { %631 = vmatmul.mubr.f32.gmra.mxu0 %v87_v27  ;;  %686 = vmatprep.subr.mxu0 %v374_v43 }
  0x5b   :  { %633 = vmatprep.mubr.f32.mxu0 %v88_v28  ;;  %687 = vmatpush3.msra.mxu0 %v374_v43 }
  0x5c   :  { %688 = vmatprep.subr.mxu0 %v373_v44 }
  0x5d   :  { %689 = vmatpush3.msra.mxu0 %v373_v44 }
  0x5e   :  { %634 = vmatmul.mubr.f32.gmra.mxu0 %v89_v29  ;;  %690 = vmatprep.subr.mxu0 %v372_v45 }
  0x5f   :  { %691 = vmatpush3.msra.mxu0 %v372_v45 }
  0x60   :  { %692 = vmatprep.subr.mxu0 %v371_v7 }
  0x61   :  { %693 = vmatpush3.msra.mxu0 %v371_v7 }
  0x62   :  { %694 = vmatprep.subr.mxu0 %v370_v8 }
  0x63   :  { %695 = vmatpush3.msra.mxu0 %v370_v8 }
  0x64   :  { %696 = vmatprep.subr.mxu0 %v369_v9 }
  0x65   :  { %697 = vmatpush3.msra.mxu0 %v369_v9 }
  0x66   :  { %698 = vmatprep.subr.mxu0 %v368_v10 }
  0x67   :  { %699 = vmatpush3.msra.mxu0 %v368_v10 }
  0x68   :  { %700 = vmatprep.subr.mxu0 %v367_v11 }
  0x69   :  { %701 = vmatpush3.msra.mxu0 %v367_v11 }
  0x6a   :  { %702 = vmatprep.subr.mxu0 %v366_v12 }
  0x6b   :  { %703 = vmatpush3.msra.mxu0 %v366_v12 }
  0x6c   :  { %704 = vmatprep.subr.mxu0 %v365_v13 }
  0x6d   :  { %705 = vmatpush3.msra.mxu0 %v365_v13 }
  0x6e   :  { %706 = vmatprep.subr.mxu0 %v364_v14 }
  0x6f   :  { %707 = vmatpush3.msra.mxu0 %v364_v14 }
  0x70   :  { %708 = vmatprep.subr.mxu0 %v363_v15 }
  0x71   :  { %709 = vmatpush3.msra.mxu0 %v363_v15 }
  0x72   :  { %710 = vmatprep.subr.mxu0 %v362_v16 }
  0x73   :  { %711 = vmatpush3.msra.mxu0 %v362_v16 }
 0x112   :  { %v626_v47 = vpop.f32.mrf.mxu0 }
 0x113   :  { %v185_v48 = vadd.f32 %v626_v47, %v517_v46 }
 0x114   :  { %v179_v49 = vpop.f32.mrf.mxu0 }
 0x115   :  { %v180_v50 = vadd.f32 %v517_v46, %v179_v49 }
 0x116   :  { %v629_v51 = vpop.f32.mrf.mxu0 }
 0x117   :  { %763 = vtanh.f32 %v180_v50  ;;  %v195_v52 = vadd.f32 %v629_v51, %v517_v46 }
 0x118   :  { %765 = vtanh.f32 %v185_v48  ;;  %v189_v53 = vpop.f32.mrf.mxu0 }
 0x119   :  { %v190_v54 = vadd.f32 %v517_v46, %v189_v53 }
 0x11a   :  { %v632_v55 = vpop.f32.mrf.mxu0 }
 0x11b   :  { %767 = vtanh.f32 %v190_v54  ;;  %v205_v56 = vadd.f32 %v632_v55, %v517_v46 }
 0x11c   :  { %769 = vtanh.f32 %v195_v52  ;;  %v199_v57 = vpop.f32.mrf.mxu0 }
 0x11d   :  { %v200_v58 = vadd.f32 %v517_v46, %v199_v57 }
 0x11e   :  { %v635_v59 = vpop.f32.mrf.mxu0 }
 0x11f   :  { %771 = vtanh.f32 %v200_v58  ;;  %v215_v60 = vadd.f32 %v635_v59, %v517_v46 }
 0x120   :  { %773 = vtanh.f32 %v205_v56  ;;  %v209_v61 = vpop.f32.mrf.mxu0 }
 0x121   :  { %v210_v62 = vadd.f32 %v517_v46, %v209_v61 }
 0x123   :  { %775 = vtanh.f32 %v210_v62 }
 0x124   :  { %v764_v63 = vpop.eup %763  ;;  %777 = vtanh.f32 %v215_v60 }
 0x125   :  { %v766_v0 = vpop.eup %765  ;;  %668 = vmatprep.mubr.f32.mxu1 %v764_v63 }
 0x126   :  { %669 = vmatmul.mubr.f32.vlgmr.msra.gmra.mxu1 %v766_v0 }
 0x127   :  { %740 = vmatpush3.msra.mxu1 %v377_v40 }
 0x128   :  { %v768_v1 = vpop.eup %767  ;;  %725 = vmatprep.subr.mxu1 %v376_v41 }
 0x129   :  { %v770_v2 = vpop.eup %769  ;;  %671 = vmatprep.mubr.f32.mxu1 %v768_v1  ;;  %741 = vmatpush3.msra.mxu1 %v376_v41 }
 0x12a   :  { %672 = vmatmul.mubr.f32.gmra.mxu1 %v770_v2  ;;  %726 = vmatprep.subr.mxu1 %v375_v42 }
 0x12b   :  { %742 = vmatpush3.msra.mxu1 %v375_v42  ;;  %v519_v42 = vld [vmem:[%s995_s6] ss:$0 sm:$0xff]  ;;  %s503_s6 = sshll.u32 %s909_s23, 4  ;;  %s504_s6 = int_to_ptr.vmem [resolvable:$true] %s503_s6 }
 0x12c   :  { %v772_v3 = vpop.eup %771  ;;  %727 = vmatprep.subr.mxu1 %v374_v43  ;;  %s875_s24 = scalar_lea.vmem %s504_s6, 1024  ;;  %p880_p7 = scmp.lt.s32.totalorder %s504_s6, %s504_s6 }
 0x12d   :  { %v774_v4 = vpop.eup %773  ;;  %674 = vmatprep.mubr.f32.mxu1 %v772_v3  ;;  %743 = vmatpush3.msra.mxu1 %v374_v43  ;;  %p876_p6 = scmp.ne.s32.totalorder %s504_s6, %s875_s24  ;;  %p881_p8 = scmp.lt.s32.totalorder %s875_s24, %s875_s24 }
 0x12e   :  { %675 = vmatmul.mubr.f32.gmra.mxu1 %v774_v4  ;;  %728 = vmatprep.subr.mxu1 %v373_v44 }
 0x12f   :  { %744 = vmatpush3.msra.mxu1 %v373_v44  ;;  %p882_p9 = por %p881_p8, %p880_p7 }
 0x130   :  { %v776_v5 = vpop.eup %775  ;;  %729 = vmatprep.subr.mxu1 %v372_v45 }
 0x131   :  { %v778_v6 = vpop.eup %777  ;;  %677 = vmatprep.mubr.f32.mxu1 %v776_v5  ;;  %745 = vmatpush3.msra.mxu1 %v372_v45  ;;  %p883_p10 = pnand %p882_p9, %p876_p6 }
 0x132   :  { %678 = vmatmul.mubr.f32.gmra.mxu1 %v778_v6  ;;  %730 = vmatprep.subr.mxu1 %v371_v7 }
 0x133   :  { %746 = vmatpush3.msra.mxu1 %v371_v7 }
 0x134   :  { %731 = vmatprep.subr.mxu1 %v370_v8 }
 0x135   :  { %747 = vmatpush3.msra.mxu1 %v370_v8 }
 0x136   :  { %732 = vmatprep.subr.mxu1 %v369_v9 }
 0x137   :  { %748 = vmatpush3.msra.mxu1 %v369_v9 }
 0x138   :  { %733 = vmatprep.subr.mxu1 %v368_v10 }
 0x139   :  { %749 = vmatpush3.msra.mxu1 %v368_v10 }
 0x13a   :  { %734 = vmatprep.subr.mxu1 %v367_v11 }
 0x13b   :  { %750 = vmatpush3.msra.mxu1 %v367_v11 }
 0x13c   :  { %735 = vmatprep.subr.mxu1 %v366_v12 }
 0x13d   :  { %751 = vmatpush3.msra.mxu1 %v366_v12 }
 0x13e   :  { %736 = vmatprep.subr.mxu1 %v365_v13 }
 0x13f   :  { %752 = vmatpush3.msra.mxu1 %v365_v13 }
 0x140   :  { %737 = vmatprep.subr.mxu1 %v364_v14 }
 0x141   :  { %753 = vmatpush3.msra.mxu1 %v364_v14 }
 0x142   :  { %738 = vmatprep.subr.mxu1 %v363_v15 }
 0x143   :  { %754 = vmatpush3.msra.mxu1 %v363_v15 }
 0x144   :  { %739 = vmatprep.subr.mxu1 %v362_v16 }
 0x145   :  { %755 = vmatpush3.msra.mxu1 %v362_v16 }
 0x1e6   :  { %v670_v18 = vpop.f32.mrf.mxu1 }
 0x1e7   :  { %v321_v19 = vadd.f32 %v670_v18, %v518_v17 }
 0x1e8   :  { %v315_v20 = vpop.f32.mrf.mxu1 }
 0x1e9   :  { %v316_v21 = vadd.f32 %v518_v17, %v315_v20 }
 0x1ea   :  { %v673_v22 = vpop.f32.mrf.mxu1 }
 0x1eb   :  { %779 = vtanh.f32 %v316_v21  ;;  %v331_v23 = vadd.f32 %v673_v22, %v518_v17 }
 0x1ec   :  { %781 = vtanh.f32 %v321_v19  ;;  %v325_v24 = vpop.f32.mrf.mxu1 }
 0x1ed   :  { %v326_v25 = vadd.f32 %v518_v17, %v325_v24 }
 0x1ee   :  { %v676_v26 = vpop.f32.mrf.mxu1 }
 0x1ef   :  { %783 = vtanh.f32 %v326_v25  ;;  %v341_v27 = vadd.f32 %v676_v26, %v518_v17 }
 0x1f0   :  { %785 = vtanh.f32 %v331_v23  ;;  %v335_v28 = vpop.f32.mrf.mxu1 }
 0x1f1   :  { %v336_v29 = vadd.f32 %v518_v17, %v335_v28 }
 0x1f2   :  { %v679_v30 = vpop.f32.mrf.mxu1 }
 0x1f3   :  { %787 = vtanh.f32 %v336_v29  ;;  %v351_v31 = vadd.f32 %v679_v30, %v518_v17 }
 0x1f4   :  { %789 = vtanh.f32 %v341_v27  ;;  %v345_v32 = vpop.f32.mrf.mxu1 }
 0x1f5   :  { %v346_v33 = vadd.f32 %v518_v17, %v345_v32 }
 0x1f7   :  { %791 = vtanh.f32 %v346_v33 }
 0x1f8   :  { %v780_v34 = vpop.eup %779  ;;  %793 = vtanh.f32 %v351_v31 }
 0x1f9   :  { %v782_v35 = vpop.eup %781  ;;  %712 = vmatprep.mubr.f32.mxu0 %v780_v34 }
 0x1fa   :  { %713 = vmatmul.mubr.f32.vlgmr.msra.gmra.mxu0 %v782_v35 }
 0x1fc   :  { %v784_v36 = vpop.eup %783 }
 0x1fd   :  { %v786_v37 = vpop.eup %785  ;;  %715 = vmatprep.mubr.f32.mxu0 %v784_v36 }
 0x1fe   :  { %716 = vmatmul.mubr.f32.gmra.mxu0 %v786_v37 }
 0x200   :  { %v788_v38 = vpop.eup %787 }
 0x201   :  { %v790_v39 = vpop.eup %789  ;;  %718 = vmatprep.mubr.f32.mxu1 %v788_v38 }
 0x202   :  { %719 = vmatmul.mubr.f32.vlgmr.msra.gmra.mxu1 %v790_v39 }
 0x204   :  { %v792_v40 = vpop.eup %791 }
 0x205   :  { %v794_v41 = vpop.eup %793  ;;  %721 = vmatprep.mubr.f32.mxu1 %v792_v40 }
 0x206   :  { %722 = vmatmul.mubr.f32.gmra.mxu1 %v794_v41 }
 0x2ba   :  { %v714_v43 = vpop.f32.mrf.mxu0 }
 0x2bb   :  { %v457_v44 = vadd.f32 %v714_v43, %v519_v42 }
 0x2bc   :  { %v451_v45 = vpop.f32.mrf.mxu0 }
 0x2bd   :  { %491 = vst [vmem:[#allocation10 + $0x8] sm:$0xff] %v457_v44  ;;  %v452_v46 = vadd.f32 %v519_v42, %v451_v45 }
 0x2be   :  { %v717_v47 = vpop.f32.mrf.mxu0 }
 0x2bf   :  { %490 = vst [vmem:[#allocation10] sm:$0xff] %v452_v46  ;;  %v467_v48 = vadd.f32 %v717_v47, %v519_v42 }
 0x2c0   :  { %v461_v49 = vpop.f32.mrf.mxu0 }
 0x2c1   :  { %493 = vst [vmem:[#allocation10 + $0x18] sm:$0xff] %v467_v48  ;;  %v462_v50 = vadd.f32 %v519_v42, %v461_v49 }
 0x2c2   :  { %v720_v51 = vpop.f32.mrf.mxu1 }
 0x2c3   :  { %492 = vst [vmem:[#allocation10 + $0x10] sm:$0xff] %v462_v50  ;;  %v477_v52 = vadd.f32 %v720_v51, %v519_v42 }
 0x2c4   :  { %v471_v53 = vpop.f32.mrf.mxu1 }
 0x2c5   :  { %495 = vst [vmem:[#allocation10 + $0x28] sm:$0xff] %v477_v52  ;;  %v472_v54 = vadd.f32 %v519_v42, %v471_v53 }
 0x2c6   :  { %v723_v55 = vpop.f32.mrf.mxu1 }
 0x2c7   :  { %494 = vst [vmem:[#allocation10 + $0x20] sm:$0xff] %v472_v54  ;;  %v487_v56 = vadd.f32 %v723_v55, %v519_v42 }
 0x2c8   :  { %v481_v57 = vpop.f32.mrf.mxu1 }
 0x2c9   :  { %497 = vst [vmem:[#allocation10 + $0x38] sm:$0xff] %v487_v56  ;;  %v482_v58 = vadd.f32 %v519_v42, %v481_v57 }
 0x2cb   :  { %496 = vst [vmem:[#allocation10 + $0x30] sm:$0xff] %v482_v58 }
 0x2cc   :  { %886 = shalt.err (!%p883_p10)
}
 0x2cd   :  { %509 = dma.vmem_to_hbm [thread:$0]  %s504_s6, 1024, %s996_s7, [#allocation4], %s905_s29, %s905_s29, %s906_s30  }
 0x2ce   :  { %901 = dma.done.wait [#allocation4], 1024  }
 0x2cf   :  { %902 = vsyncadd [#allocation4], 4294966272 }
 0x2d0   :  { %513 = vsyncpa [#allocation3], 1 }
 0x2d1   :  { %514 = vsyncpa [#allocation6], 1 }
 0x2d2   :  { %515 = vsyncpa [#allocation9], 1 }
 0x2d3   :  { %516 = vsyncpa [#allocation4], 1 }

</bundles_post_ra>
